<compile_context>
chip_gen: v7x
topology: tpu7x:2x2x1
jax: 0.10.0
libtpu: 0.0.40
codegen_flags: <defaults>
</compile_context>

<pallas_src>
import functools

import jax
import jax.numpy as jnp
from jax import lax
from jax.experimental import pallas as pl
from jax.experimental.pallas import tpu as pltpu


def _round_up(v, m):
    return (v + m - 1) // m * m


def _conv_layer_kernel(x_ref, w_ref, b_ref, scale_ref, shift_ref, o_ref, acc_ref,
                       *, do_inorm, activation, eps):
    """One (sample, P-tile) x (K-tile) step of the fused conv layer.

    x_ref:   (1, tp, tk)  bf16 im2col patch tile
    w_ref:   (tk, OCp)    bf16 weight tile
    b/scale/shift_ref: (1, OCp) f32
    o_ref:   (1, tp, OCp) output tile (resident across the K axis)
    acc_ref: (tp, OCp)    f32 accumulator scratch
    """
    k = pl.program_id(2)

    @pl.when(k == 0)
    def _init():
        acc_ref[...] = jnp.zeros_like(acc_ref)

    acc_ref[...] += jnp.dot(x_ref[0], w_ref[...],
                            preferred_element_type=jnp.float32)

    @pl.when(k == pl.num_programs(2) - 1)
    def _epilogue():
        y = acc_ref[...] + b_ref[...]                         # (tp, OCp) f32
        if do_inorm:
            # InstanceNorm over spatial rows per channel of this sample.
            # Only valid because tp == P for InstanceNorm layers.
            mean = jnp.mean(y, axis=0, keepdims=True)
            var = jnp.mean(jnp.square(y - mean), axis=0, keepdims=True)
            y = (y - mean) * lax.rsqrt(var + eps)
            y = y * scale_ref[...] + shift_ref[...]
        if activation == "leaky":
            y = jnp.where(y > 0, y, 0.2 * y)
        elif activation == "sigmoid":
            y = 1.0 / (1.0 + jnp.exp(-y))
        o_ref[0] = y.astype(o_ref.dtype)


def _im2col_nhwc(x, k, stride, pad):
    """x: (N, H, W, C) -> patches (N, OH*OW, k*k*C), OH, OW."""
    N, H, W, C = x.shape
    xp = jnp.pad(x, ((0, 0), (pad, pad), (pad, pad), (0, 0)))
    OH = (H + 2 * pad - k) // stride + 1
    OW = (W + 2 * pad - k) // stride + 1
    cols = []
    for i in range(k):
        for j in range(k):
            cols.append(xp[:, i:i + stride * OH:stride, j:j + stride * OW:stride, :])
    p = jnp.stack(cols, axis=3)                     # (N, OH, OW, k*k, C)
    return p.reshape(N, OH * OW, k * k * C), OH, OW


def conv_layer(x_nhwc, w, b, scale, shift, *, stride, pad, do_inorm, activation,
               eps=1e-9, mxu_dtype=jnp.bfloat16, out_dtype=jnp.float32):
    """Conv2d(+bias) [+InstanceNorm] [+activation], fused in one Pallas kernel.

    x_nhwc: (N, H, W, C) activations; w: (OC, IC, k, k) PyTorch-layout weights.
    Returns (N, OH, OW, OC) in `out_dtype`.
    """
    OC, IC, kh, kw = w.shape
    assert kh == kw
    patches, OH, OW = _im2col_nhwc(x_nhwc, kh, stride, pad)   # (N, P, CKK)
    N, P, CKK = patches.shape

    # --- tiling / padding -------------------------------------------------
    CKKp = _round_up(CKK, 128)
    tk = CKKp if CKKp <= 512 else 512
    CKKp = _round_up(CKKp, tk)
    nk = CKKp // tk

    OCp = _round_up(OC, 128)            # lane-dense output, full MXU columns

    if do_inorm or P <= 1024:
        tp, Pp = P, P                   # InstanceNorm needs the whole spatial extent
    else:
        tp = 1024
        Pp = _round_up(P, tp)
    n_p = Pp // tp

    # --- operands: zero-pad, feed the MXU bf16 ---------------------------
    patches = jnp.pad(patches, ((0, 0), (0, Pp - P), (0, CKKp - CKK)))
    patches = patches.astype(mxu_dtype)
    # (OC, IC, kh, kw) -> (kh, kw, IC, OC): matches the (ki, kj, c) patch order.
    w_mat = jnp.transpose(w, (2, 3, 1, 0)).reshape(CKK, OC)
    w_mat = jnp.pad(w_mat, ((0, CKKp - CKK), (0, OCp - OC))).astype(mxu_dtype)
    b_row = jnp.pad(b.reshape(1, OC), ((0, 0), (0, OCp - OC))).astype(jnp.float32)
    s_row = jnp.pad(scale.reshape(1, OC), ((0, 0), (0, OCp - OC))).astype(jnp.float32)
    sh_row = jnp.pad(shift.reshape(1, OC), ((0, 0), (0, OCp - OC))).astype(jnp.float32)

    mxu_bytes = jnp.dtype(mxu_dtype).itemsize
    out_bytes = jnp.dtype(out_dtype).itemsize
    vmem_bytes = (2 * tp * tk * mxu_bytes        # double-buffered patch tile
                  + 2 * tk * OCp * mxu_bytes     # double-buffered weight tile
                  + 2 * tp * OCp * out_bytes     # double-buffered output tile
                  + tp * OCp * 4                 # f32 accumulator scratch
                  + 6 * OCp * 4)                 # bias / scale / shift rows
    vmem_limit = int(min(max(2 * vmem_bytes, 32 * 1024 * 1024),
                         60 * 1024 * 1024))      # headroom under v7x's 64 MiB

    kernel = functools.partial(_conv_layer_kernel, do_inorm=do_inorm,
                               activation=activation, eps=eps)
    out = pl.pallas_call(
        kernel,
        out_shape=jax.ShapeDtypeStruct((N, Pp, OCp), out_dtype),
        grid_spec=pltpu.PrefetchScalarGridSpec(
            num_scalar_prefetch=0,
            grid=(N, n_p, nk),                       # reduction (K) axis last
            in_specs=[
                pl.BlockSpec((1, tp, tk), lambda n, p, k: (n, p, k)),
                pl.BlockSpec((tk, OCp), lambda n, p, k: (k, 0)),
                pl.BlockSpec((1, OCp), lambda n, p, k: (0, 0)),
                pl.BlockSpec((1, OCp), lambda n, p, k: (0, 0)),
                pl.BlockSpec((1, OCp), lambda n, p, k: (0, 0)),
            ],
            out_specs=pl.BlockSpec((1, tp, OCp), lambda n, p, k: (n, p, 0)),
            scratch_shapes=[pltpu.VMEM((tp, OCp), jnp.float32)],
        ),
        compiler_params=pltpu.CompilerParams(
            dimension_semantics=("parallel", "parallel", "arbitrary"),
            vmem_limit_bytes=vmem_limit,
        ),
    )(patches, w_mat, b_row, s_row, sh_row)

    # Strip padding; stay NHWC between layers (no transpose round trips).
    return out[:, :P, :OC].reshape(N, OH, OW, OC)


def init_params(key, input_nc, ndf):
    ks = jax.random.split(key, 8)

    def conv_init(k, oc, ic):
        kw, kb = jax.random.split(k)
        fan_in = ic * 4 * 4
        bound = 1.0 / jnp.sqrt(jnp.float32(fan_in))
        w = jax.random.uniform(kw, (oc, ic, 4, 4), jnp.float32, -bound, bound)
        b = jax.random.uniform(kb, (oc,), jnp.float32, -bound, bound)
        return w, b

    p = {}
    p["w1"], p["b1"] = conv_init(ks[0], ndf, input_nc)
    p["w2"], p["b2"] = conv_init(ks[1], ndf * 2, ndf)
    p["w3"], p["b3"] = conv_init(ks[2], ndf * 4, ndf * 2)
    p["w4"], p["b4"] = conv_init(ks[3], 1, ndf * 4)
    # InstanceNormalization: scale ~ U[0,1), shift = 0 (matches _reset_parameters)
    p["scale2"] = jax.random.uniform(ks[4], (ndf * 2,), jnp.float32)
    p["shift2"] = jnp.zeros((ndf * 2,), jnp.float32)
    p["scale3"] = jax.random.uniform(ks[5], (ndf * 4,), jnp.float32)
    p["shift3"] = jnp.zeros((ndf * 4,), jnp.float32)
    return p


def discriminator_forward(params, x):
    """x: (N, C, H, W) NCHW like the PyTorch module; returns NCHW."""
    o = jnp.transpose(x, (0, 2, 3, 1))               # NCHW -> NHWC once
    ndf = params["w1"].shape[0]
    ones1 = jnp.ones((ndf,), jnp.float32)
    zeros1 = jnp.zeros((ndf,), jnp.float32)
    o = conv_layer(o, params["w1"], params["b1"], ones1, zeros1,
                   stride=2, pad=1, do_inorm=False, activation="leaky",
                   out_dtype=jnp.bfloat16)
    o = conv_layer(o, params["w2"], params["b2"], params["scale2"], params["shift2"],
                   stride=2, pad=1, do_inorm=True, activation="leaky",
                   out_dtype=jnp.bfloat16)
    o = conv_layer(o, params["w3"], params["b3"], params["scale3"], params["shift3"],
                   stride=1, pad=1, do_inorm=True, activation="leaky",
                   out_dtype=jnp.bfloat16)
    ones4 = jnp.ones((1,), jnp.float32)
    zeros4 = jnp.zeros((1,), jnp.float32)
    o = conv_layer(o, params["w4"], params["b4"], ones4, zeros4,
                   stride=1, pad=1, do_inorm=False, activation="sigmoid",
                   out_dtype=jnp.float32)
    return jnp.transpose(o, (0, 3, 1, 2))            # back to NCHW


def reference_forward(params, x, eps=1e-9):
    """Plain-JAX reference matching the PyTorch module semantics.

    Conv operands are cast to bf16 (accumulating in f32), mirroring the
    kernel's MXU precision so the comparison is apples-to-apples.
    """
    def conv(v, w, b, stride, pad):
        y = lax.conv_general_dilated(
            v.astype(jnp.bfloat16), w.astype(jnp.bfloat16),
            (stride, stride), ((pad, pad), (pad, pad)),
            dimension_numbers=("NCHW", "OIHW", "NCHW"),
            preferred_element_type=jnp.float32)
        return y + b[None, :, None, None]

    def inorm(v, scale, shift):
        mean = jnp.mean(v, axis=(2, 3), keepdims=True)
        var = jnp.mean((v - mean) ** 2, axis=(2, 3), keepdims=True)  # biased var
        y = (v - mean) / jnp.sqrt(var + eps)
        return y * scale[None, :, None, None] + shift[None, :, None, None]

    lrelu = lambda v: jnp.where(v > 0, v, 0.2 * v)
    o = lrelu(conv(x, params["w1"], params["b1"], 2, 1))
    o = lrelu(inorm(conv(o, params["w2"], params["b2"], 2, 1),
                    params["scale2"], params["shift2"]))
    o = lrelu(inorm(conv(o, params["w3"], params["b3"], 1, 1),
                    params["scale3"], params["shift3"]))
    o = jax.nn.sigmoid(conv(o, params["w4"], params["b4"], 1, 1))
    return o


if __name__ == "__main__":
    key = jax.random.PRNGKey(0)
    kx, kp = jax.random.split(key)

    # Small shapes consistent with the module: N=2, input_nc=4, H=W=16, ndf=8.
    N, input_nc, H, W = 2, 4, 16, 16
    ndf = 8
    x = jax.random.normal(kx, (N, input_nc, H, W), dtype=jnp.float32)
    params = init_params(kp, input_nc, ndf)

    fwd = jax.jit(discriminator_forward)
    out = jax.block_until_ready(fwd(params, x))

    ref = jax.block_until_ready(reference_forward(params, x))
    assert out.shape == ref.shape == (N, 1, 2, 2), out.shape
    # Tolerance covers bf16 operand quantization / accumulation-order effects.
    assert jnp.allclose(out, ref, atol=2e-3, rtol=2e-3), \
        float(jnp.max(jnp.abs(out - ref)))

    print("KERNEL_OK")
</pallas_src>

<mosaic_0001>
module attributes {stable_mosaic.version = 11 : i64} {
  func.func @_conv_layer_kernel(%arg0: i32, %arg1: i32, %arg2: i32, %arg3: memref<1x64x128xbf16, #tpu.memory_space<vmem>>, %arg4: memref<128x128xbf16, #tpu.memory_space<vmem>>, %arg5: memref<1x128xf32, #tpu.memory_space<vmem>>, %arg6: memref<1x128xf32, #tpu.memory_space<vmem>>, %arg7: memref<1x128xf32, #tpu.memory_space<vmem>>, %arg8: memref<1x64x128xbf16, #tpu.memory_space<vmem>>, %arg9: memref<64x128xf32, #tpu.memory_space<vmem>>) attributes {dimension_semantics = [#tpu.dimension_semantics<parallel>, #tpu.dimension_semantics<parallel>, #tpu.dimension_semantics<arbitrary>], iteration_bounds = array<i64: 2, 1, 1>, scalar_prefetch = 0 : i64, scratch_operands = 1 : i64, tpu.core_type = #tpu.core_type<tc>, window_params = [{transform_indices = @transform_0, window_bounds = array<i64: 1, 64, 128>}, {transform_indices = @transform_1, window_bounds = array<i64: 128, 128>}, {pipeline_mode = #tpu.pipeline_mode<synchronous>, transform_indices = @transform_2, window_bounds = array<i64: 1, 128>}, {pipeline_mode = #tpu.pipeline_mode<synchronous>, transform_indices = @transform_3, window_bounds = array<i64: 1, 128>}, {pipeline_mode = #tpu.pipeline_mode<synchronous>, transform_indices = @transform_4, window_bounds = array<i64: 1, 128>}, {transform_indices = @transform_5, window_bounds = array<i64: 1, 64, 128>}]} {
    %c0_i32 = arith.constant 0 : i32
    %0 = arith.cmpi eq, %arg2, %c0_i32 : i32
    %1 = arith.extui %0 : i1 to i32
    %c0_i32_0 = arith.constant 0 : i32
    %2 = arith.cmpi ne, %1, %c0_i32_0 : i32
    scf.if %2 {
      %cst_11 = arith.constant 0.000000e+00 : f32
      %13 = vector.broadcast %cst_11 : f32 to vector<64x128xf32>
      %c0_12 = arith.constant 0 : index
      %c0_13 = arith.constant 0 : index
      %14 = vector.load %arg9[%c0_12, %c0_13] : memref<64x128xf32, #tpu.memory_space<vmem>>, vector<64x128xf32>
      tpu.vector_store %arg9[%c0_12, %c0_13], %13 {strides = array<i32>} : memref<64x128xf32, #tpu.memory_space<vmem>>, vector<64x128xf32>,
    } else {
    }
    %c0 = arith.constant 0 : index
    %c0_1 = arith.constant 0 : index
    %3 = vector.load %arg9[%c0, %c0_1] : memref<64x128xf32, #tpu.memory_space<vmem>>, vector<64x128xf32>
    %c0_2 = arith.constant 0 : index
    %c0_3 = arith.constant 0 : index
    %c0_4 = arith.constant 0 : index
    %4 = vector.load %arg3[%c0_2, %c0_3, %c0_4] : memref<1x64x128xbf16, #tpu.memory_space<vmem>>, vector<1x64x128xbf16>
    %5 = vector.shape_cast %4 : vector<1x64x128xbf16> to vector<64x128xbf16>
    %c0_5 = arith.constant 0 : index
    %c0_6 = arith.constant 0 : index
    %6 = vector.load %arg4[%c0_5, %c0_6] : memref<128x128xbf16, #tpu.memory_space<vmem>>, vector<128x128xbf16>
    %cst = arith.constant dense<0.000000e+00> : vector<64x128xf32>
    %7 = tpu.matmul %5, %6, %cst {dimension_numbers = #tpu.dot_dimension_numbers<[1], [0], [0], [1], [0, 0, 1, 1], [], []>} : vector<64x128xbf16>, vector<128x128xbf16>, vector<64x128xf32> -> vector<64x128xf32>
    %8 = arith.addf %3, %7 : vector<64x128xf32>
    %c0_7 = arith.constant 0 : index
    %c0_8 = arith.constant 0 : index
    %9 = vector.load %arg9[%c0_7, %c0_8] : memref<64x128xf32, #tpu.memory_space<vmem>>, vector<64x128xf32>
    tpu.vector_store %arg9[%c0_7, %c0_8], %8 {strides = array<i32>} : memref<64x128xf32, #tpu.memory_space<vmem>>, vector<64x128xf32>,
    %c0_i32_9 = arith.constant 0 : i32
    %10 = arith.cmpi eq, %arg2, %c0_i32_9 : i32
    %11 = arith.extui %10 : i1 to i32
    %c0_i32_10 = arith.constant 0 : i32
    %12 = arith.cmpi ne, %11, %c0_i32_10 : i32
    scf.if %12 {
      %c0_11 = arith.constant 0 : index
      %c0_12 = arith.constant 0 : index
      %13 = vector.load %arg9[%c0_11, %c0_12] : memref<64x128xf32, #tpu.memory_space<vmem>>, vector<64x128xf32>
      %c0_13 = arith.constant 0 : index
      %c0_14 = arith.constant 0 : index
      %14 = vector.load %arg5[%c0_13, %c0_14] : memref<1x128xf32, #tpu.memory_space<vmem>>, vector<1x128xf32>
      %15 = vector.broadcast %14 : vector<1x128xf32> to vector<64x128xf32>
      %16 = arith.addf %13, %15 : vector<64x128xf32>
      %cst_15 = arith.constant 0.000000e+00 : f32
      %17 = vector.broadcast %cst_15 : f32 to vector<64x128xf32>
      %18 = arith.cmpf ogt, %16, %17 : vector<64x128xf32>
      %cst_16 = arith.constant 2.000000e-01 : f32
      %19 = vector.broadcast %cst_16 : f32 to vector<64x128xf32>
      %20 = arith.mulf %19, %16 : vector<64x128xf32>
      %21 = arith.select %18, %16, %20 : vector<64x128xi1>, vector<64x128xf32>
      %22 = arith.truncf %21 : vector<64x128xf32> to vector<64x128xbf16>
      %c0_17 = arith.constant 0 : index
      %c0_18 = arith.constant 0 : index
      %c0_19 = arith.constant 0 : index
      %23 = vector.load %arg8[%c0_17, %c0_18, %c0_19] : memref<1x64x128xbf16, #tpu.memory_space<vmem>>, vector<1x64x128xbf16>
      %24 = vector.shape_cast %23 : vector<1x64x128xbf16> to vector<64x128xbf16>
      %25 = vector.shape_cast %22 : vector<64x128xbf16> to vector<1x64x128xbf16>
      tpu.vector_store %arg8[%c0_17, %c0_18, %c0_19], %25 {strides = array<i32>} : memref<1x64x128xbf16, #tpu.memory_space<vmem>>, vector<1x64x128xbf16>,
    } else {
    }
    return
  }
  func.func @transform_0(%arg0: i32, %arg1: i32, %arg2: i32) -> (i32, i32, i32) {
    %c0_i32 = arith.constant 0 : i32
    return %arg0, %arg1, %arg2 : i32, i32, i32
  }
  func.func @transform_1(%arg0: i32, %arg1: i32, %arg2: i32) -> (i32, i32) {
    %c0_i32 = arith.constant 0 : i32
    %c0_i32_0 = arith.constant 0 : i32
    return %arg2, %c0_i32 : i32, i32
  }
  func.func @transform_2(%arg0: i32, %arg1: i32, %arg2: i32) -> (i32, i32) {
    %c0_i32 = arith.constant 0 : i32
    %c0_i32_0 = arith.constant 0 : i32
    %c0_i32_1 = arith.constant 0 : i32
    return %c0_i32, %c0_i32_0 : i32, i32
  }
  func.func @transform_3(%arg0: i32, %arg1: i32, %arg2: i32) -> (i32, i32) {
    %c0_i32 = arith.constant 0 : i32
    %c0_i32_0 = arith.constant 0 : i32
    %c0_i32_1 = arith.constant 0 : i32
    return %c0_i32, %c0_i32_0 : i32, i32
  }
  func.func @transform_4(%arg0: i32, %arg1: i32, %arg2: i32) -> (i32, i32) {
    %c0_i32 = arith.constant 0 : i32
    %c0_i32_0 = arith.constant 0 : i32
    %c0_i32_1 = arith.constant 0 : i32
    return %c0_i32, %c0_i32_0 : i32, i32
  }
  func.func @transform_5(%arg0: i32, %arg1: i32, %arg2: i32) -> (i32, i32, i32) {
    %c0_i32 = arith.constant 0 : i32
    %c0_i32_0 = arith.constant 0 : i32
    return %arg0, %arg1, %c0_i32 : i32, i32, i32
  }
}

module attributes {stable_mosaic.version = 11 : i64} {
  func.func @_conv_layer_kernel(%arg0: i32, %arg1: i32, %arg2: i32, %arg3: memref<1x16x128xbf16, #tpu.memory_space<vmem>>, %arg4: memref<128x128xbf16, #tpu.memory_space<vmem>>, %arg5: memref<1x128xf32, #tpu.memory_space<vmem>>, %arg6: memref<1x128xf32, #tpu.memory_space<vmem>>, %arg7: memref<1x128xf32, #tpu.memory_space<vmem>>, %arg8: memref<1x16x128xbf16, #tpu.memory_space<vmem>>, %arg9: memref<16x128xf32, #tpu.memory_space<vmem>>) attributes {dimension_semantics = [#tpu.dimension_semantics<parallel>, #tpu.dimension_semantics<parallel>, #tpu.dimension_semantics<arbitrary>], iteration_bounds = array<i64: 2, 1, 1>, scalar_prefetch = 0 : i64, scratch_operands = 1 : i64, tpu.core_type = #tpu.core_type<tc>, window_params = [{transform_indices = @transform_0, window_bounds = array<i64: 1, 16, 128>}, {transform_indices = @transform_1, window_bounds = array<i64: 128, 128>}, {pipeline_mode = #tpu.pipeline_mode<synchronous>, transform_indices = @transform_2, window_bounds = array<i64: 1, 128>}, {pipeline_mode = #tpu.pipeline_mode<synchronous>, transform_indices = @transform_3, window_bounds = array<i64: 1, 128>}, {pipeline_mode = #tpu.pipeline_mode<synchronous>, transform_indices = @transform_4, window_bounds = array<i64: 1, 128>}, {transform_indices = @transform_5, window_bounds = array<i64: 1, 16, 128>}]} {
    %c0_i32 = arith.constant 0 : i32
    %0 = arith.cmpi eq, %arg2, %c0_i32 : i32
    %1 = arith.extui %0 : i1 to i32
    %c0_i32_0 = arith.constant 0 : i32
    %2 = arith.cmpi ne, %1, %c0_i32_0 : i32
    scf.if %2 {
      %cst_11 = arith.constant 0.000000e+00 : f32
      %13 = vector.broadcast %cst_11 : f32 to vector<16x128xf32>
      %c0_12 = arith.constant 0 : index
      %c0_13 = arith.constant 0 : index
      %14 = vector.load %arg9[%c0_12, %c0_13] : memref<16x128xf32, #tpu.memory_space<vmem>>, vector<16x128xf32>
      tpu.vector_store %arg9[%c0_12, %c0_13], %13 {strides = array<i32>} : memref<16x128xf32, #tpu.memory_space<vmem>>, vector<16x128xf32>,
    } else {
    }
    %c0 = arith.constant 0 : index
    %c0_1 = arith.constant 0 : index
    %3 = vector.load %arg9[%c0, %c0_1] : memref<16x128xf32, #tpu.memory_space<vmem>>, vector<16x128xf32>
    %c0_2 = arith.constant 0 : index
    %c0_3 = arith.constant 0 : index
    %c0_4 = arith.constant 0 : index
    %4 = vector.load %arg3[%c0_2, %c0_3, %c0_4] : memref<1x16x128xbf16, #tpu.memory_space<vmem>>, vector<1x16x128xbf16>
    %5 = vector.shape_cast %4 : vector<1x16x128xbf16> to vector<16x128xbf16>
    %c0_5 = arith.constant 0 : index
    %c0_6 = arith.constant 0 : index
    %6 = vector.load %arg4[%c0_5, %c0_6] : memref<128x128xbf16, #tpu.memory_space<vmem>>, vector<128x128xbf16>
    %cst = arith.constant dense<0.000000e+00> : vector<16x128xf32>
    %7 = tpu.matmul %5, %6, %cst {dimension_numbers = #tpu.dot_dimension_numbers<[1], [0], [0], [1], [0, 0, 1, 1], [], []>} : vector<16x128xbf16>, vector<128x128xbf16>, vector<16x128xf32> -> vector<16x128xf32>
    %8 = arith.addf %3, %7 : vector<16x128xf32>
    %c0_7 = arith.constant 0 : index
    %c0_8 = arith.constant 0 : index
    %9 = vector.load %arg9[%c0_7, %c0_8] : memref<16x128xf32, #tpu.memory_space<vmem>>, vector<16x128xf32>
    tpu.vector_store %arg9[%c0_7, %c0_8], %8 {strides = array<i32>} : memref<16x128xf32, #tpu.memory_space<vmem>>, vector<16x128xf32>,
    %c0_i32_9 = arith.constant 0 : i32
    %10 = arith.cmpi eq, %arg2, %c0_i32_9 : i32
    %11 = arith.extui %10 : i1 to i32
    %c0_i32_10 = arith.constant 0 : i32
    %12 = arith.cmpi ne, %11, %c0_i32_10 : i32
    scf.if %12 {
      %c0_11 = arith.constant 0 : index
      %c0_12 = arith.constant 0 : index
      %13 = vector.load %arg9[%c0_11, %c0_12] : memref<16x128xf32, #tpu.memory_space<vmem>>, vector<16x128xf32>
      %c0_13 = arith.constant 0 : index
      %c0_14 = arith.constant 0 : index
      %14 = vector.load %arg5[%c0_13, %c0_14] : memref<1x128xf32, #tpu.memory_space<vmem>>, vector<1x128xf32>
      %15 = vector.broadcast %14 : vector<1x128xf32> to vector<16x128xf32>
      %16 = arith.addf %13, %15 : vector<16x128xf32>
      %cst_15 = arith.constant dense<0.000000e+00> : vector<128xf32>
      %17 = vector.multi_reduction <add>, %16, %cst_15 [0] : vector<16x128xf32> to vector<128xf32>
      %18 = vector.shape_cast %17 : vector<128xf32> to vector<1x128xf32>
      %cst_16 = arith.constant 1.600000e+01 : f32
      %19 = vector.broadcast %cst_16 : f32 to vector<1x128xf32>
      %20 = arith.divf %18, %19 : vector<1x128xf32>
      %21 = vector.broadcast %20 : vector<1x128xf32> to vector<16x128xf32>
      %22 = arith.subf %16, %21 : vector<16x128xf32>
      %23 = arith.mulf %22, %22 : vector<16x128xf32>
      %cst_17 = arith.constant dense<0.000000e+00> : vector<128xf32>
      %24 = vector.multi_reduction <add>, %23, %cst_17 [0] : vector<16x128xf32> to vector<128xf32>
      %25 = vector.shape_cast %24 : vector<128xf32> to vector<1x128xf32>
      %cst_18 = arith.constant 1.600000e+01 : f32
      %26 = vector.broadcast %cst_18 : f32 to vector<1x128xf32>
      %27 = arith.divf %25, %26 : vector<1x128xf32>
      %28 = vector.broadcast %20 : vector<1x128xf32> to vector<16x128xf32>
      %29 = arith.subf %16, %28 : vector<16x128xf32>
      %cst_19 = arith.constant 9.99999971E-10 : f32
      %30 = vector.broadcast %cst_19 : f32 to vector<1x128xf32>
      %31 = arith.addf %27, %30 : vector<1x128xf32>
      %32 = math.rsqrt %31 : vector<1x128xf32>
      %33 = vector.broadcast %32 : vector<1x128xf32> to vector<16x128xf32>
      %34 = arith.mulf %29, %33 : vector<16x128xf32>
      %c0_20 = arith.constant 0 : index
      %c0_21 = arith.constant 0 : index
      %35 = vector.load %arg6[%c0_20, %c0_21] : memref<1x128xf32, #tpu.memory_space<vmem>>, vector<1x128xf32>
      %36 = vector.broadcast %35 : vector<1x128xf32> to vector<16x128xf32>
      %37 = arith.mulf %34, %36 : vector<16x128xf32>
      %c0_22 = arith.constant 0 : index
      %c0_23 = arith.constant 0 : index
      %38 = vector.load %arg7[%c0_22, %c0_23] : memref<1x128xf32, #tpu.memory_space<vmem>>, vector<1x128xf32>
      %39 = vector.broadcast %38 : vector<1x128xf32> to vector<16x128xf32>
      %40 = arith.addf %37, %39 : vector<16x128xf32>
      %cst_24 = arith.constant 0.000000e+00 : f32
      %41 = vector.broadcast %cst_24 : f32 to vector<16x128xf32>
      %42 = arith.cmpf ogt, %40, %41 : vector<16x128xf32>
      %cst_25 = arith.constant 2.000000e-01 : f32
      %43 = vector.broadcast %cst_25 : f32 to vector<16x128xf32>
      %44 = arith.mulf %43, %40 : vector<16x128xf32>
      %45 = arith.select %42, %40, %44 : vector<16x128xi1>, vector<16x128xf32>
      %46 = arith.truncf %45 : vector<16x128xf32> to vector<16x128xbf16>
      %c0_26 = arith.constant 0 : index
      %c0_27 = arith.constant 0 : index
      %c0_28 = arith.constant 0 : index
      %47 = vector.load %arg8[%c0_26, %c0_27, %c0_28] : memref<1x16x128xbf16, #tpu.memory_space<vmem>>, vector<1x16x128xbf16>
      %48 = vector.shape_cast %47 : vector<1x16x128xbf16> to vector<16x128xbf16>
      %49 = vector.shape_cast %46 : vector<16x128xbf16> to vector<1x16x128xbf16>
      tpu.vector_store %arg8[%c0_26, %c0_27, %c0_28], %49 {strides = array<i32>} : memref<1x16x128xbf16, #tpu.memory_space<vmem>>, vector<1x16x128xbf16>,
    } else {
    }
    return
  }
  func.func @transform_0(%arg0: i32, %arg1: i32, %arg2: i32) -> (i32, i32, i32) {
    %c0_i32 = arith.constant 0 : i32
    return %arg0, %arg1, %arg2 : i32, i32, i32
  }
  func.func @transform_1(%arg0: i32, %arg1: i32, %arg2: i32) -> (i32, i32) {
    %c0_i32 = arith.constant 0 : i32
    %c0_i32_0 = arith.constant 0 : i32
    return %arg2, %c0_i32 : i32, i32
  }
  func.func @transform_2(%arg0: i32, %arg1: i32, %arg2: i32) -> (i32, i32) {
    %c0_i32 = arith.constant 0 : i32
    %c0_i32_0 = arith.constant 0 : i32
    %c0_i32_1 = arith.constant 0 : i32
    return %c0_i32, %c0_i32_0 : i32, i32
  }
  func.func @transform_3(%arg0: i32, %arg1: i32, %arg2: i32) -> (i32, i32) {
    %c0_i32 = arith.constant 0 : i32
    %c0_i32_0 = arith.constant 0 : i32
    %c0_i32_1 = arith.constant 0 : i32
    return %c0_i32, %c0_i32_0 : i32, i32
  }
  func.func @transform_4(%arg0: i32, %arg1: i32, %arg2: i32) -> (i32, i32) {
    %c0_i32 = arith.constant 0 : i32
    %c0_i32_0 = arith.constant 0 : i32
    %c0_i32_1 = arith.constant 0 : i32
    return %c0_i32, %c0_i32_0 : i32, i32
  }
  func.func @transform_5(%arg0: i32, %arg1: i32, %arg2: i32) -> (i32, i32, i32) {
    %c0_i32 = arith.constant 0 : i32
    %c0_i32_0 = arith.constant 0 : i32
    return %arg0, %arg1, %c0_i32 : i32, i32, i32
  }
}

module attributes {stable_mosaic.version = 11 : i64} {
  func.func @_conv_layer_kernel(%arg0: i32, %arg1: i32, %arg2: i32, %arg3: memref<1x9x256xbf16, #tpu.memory_space<vmem>>, %arg4: memref<256x128xbf16, #tpu.memory_space<vmem>>, %arg5: memref<1x128xf32, #tpu.memory_space<vmem>>, %arg6: memref<1x128xf32, #tpu.memory_space<vmem>>, %arg7: memref<1x128xf32, #tpu.memory_space<vmem>>, %arg8: memref<1x9x128xbf16, #tpu.memory_space<vmem>>, %arg9: memref<9x128xf32, #tpu.memory_space<vmem>>) attributes {dimension_semantics = [#tpu.dimension_semantics<parallel>, #tpu.dimension_semantics<parallel>, #tpu.dimension_semantics<arbitrary>], iteration_bounds = array<i64: 2, 1, 1>, scalar_prefetch = 0 : i64, scratch_operands = 1 : i64, tpu.core_type = #tpu.core_type<tc>, window_params = [{transform_indices = @transform_0, window_bounds = array<i64: 1, 9, 256>}, {transform_indices = @transform_1, window_bounds = array<i64: 256, 128>}, {pipeline_mode = #tpu.pipeline_mode<synchronous>, transform_indices = @transform_2, window_bounds = array<i64: 1, 128>}, {pipeline_mode = #tpu.pipeline_mode<synchronous>, transform_indices = @transform_3, window_bounds = array<i64: 1, 128>}, {pipeline_mode = #tpu.pipeline_mode<synchronous>, transform_indices = @transform_4, window_bounds = array<i64: 1, 128>}, {transform_indices = @transform_5, window_bounds = array<i64: 1, 9, 128>}]} {
    %c0_i32 = arith.constant 0 : i32
    %0 = arith.cmpi eq, %arg2, %c0_i32 : i32
    %1 = arith.extui %0 : i1 to i32
    %c0_i32_0 = arith.constant 0 : i32
    %2 = arith.cmpi ne, %1, %c0_i32_0 : i32
    scf.if %2 {
      %cst_11 = arith.constant 0.000000e+00 : f32
      %13 = vector.broadcast %cst_11 : f32 to vector<9x128xf32>
      %c0_12 = arith.constant 0 : index
      %c0_13 = arith.constant 0 : index
      %14 = vector.load %arg9[%c0_12, %c0_13] : memref<9x128xf32, #tpu.memory_space<vmem>>, vector<9x128xf32>
      tpu.vector_store %arg9[%c0_12, %c0_13], %13 {strides = array<i32>} : memref<9x128xf32, #tpu.memory_space<vmem>>, vector<9x128xf32>,
    } else {
    }
    %c0 = arith.constant 0 : index
    %c0_1 = arith.constant 0 : index
    %3 = vector.load %arg9[%c0, %c0_1] : memref<9x128xf32, #tpu.memory_space<vmem>>, vector<9x128xf32>
    %c0_2 = arith.constant 0 : index
    %c0_3 = arith.constant 0 : index
    %c0_4 = arith.constant 0 : index
    %4 = vector.load %arg3[%c0_2, %c0_3, %c0_4] : memref<1x9x256xbf16, #tpu.memory_space<vmem>>, vector<1x9x256xbf16>
    %5 = vector.shape_cast %4 : vector<1x9x256xbf16> to vector<9x256xbf16>
    %c0_5 = arith.constant 0 : index
    %c0_6 = arith.constant 0 : index
    %6 = vector.load %arg4[%c0_5, %c0_6] : memref<256x128xbf16, #tpu.memory_space<vmem>>, vector<256x128xbf16>
    %cst = arith.constant dense<0.000000e+00> : vector<9x128xf32>
    %7 = tpu.matmul %5, %6, %cst {dimension_numbers = #tpu.dot_dimension_numbers<[1], [0], [0], [1], [0, 0, 1, 1], [], []>} : vector<9x256xbf16>, vector<256x128xbf16>, vector<9x128xf32> -> vector<9x128xf32>
    %8 = arith.addf %3, %7 : vector<9x128xf32>
    %c0_7 = arith.constant 0 : index
    %c0_8 = arith.constant 0 : index
    %9 = vector.load %arg9[%c0_7, %c0_8] : memref<9x128xf32, #tpu.memory_space<vmem>>, vector<9x128xf32>
    tpu.vector_store %arg9[%c0_7, %c0_8], %8 {strides = array<i32>} : memref<9x128xf32, #tpu.memory_space<vmem>>, vector<9x128xf32>,
    %c0_i32_9 = arith.constant 0 : i32
    %10 = arith.cmpi eq, %arg2, %c0_i32_9 : i32
    %11 = arith.extui %10 : i1 to i32
    %c0_i32_10 = arith.constant 0 : i32
    %12 = arith.cmpi ne, %11, %c0_i32_10 : i32
    scf.if %12 {
      %c0_11 = arith.constant 0 : index
      %c0_12 = arith.constant 0 : index
      %13 = vector.load %arg9[%c0_11, %c0_12] : memref<9x128xf32, #tpu.memory_space<vmem>>, vector<9x128xf32>
      %c0_13 = arith.constant 0 : index
      %c0_14 = arith.constant 0 : index
      %14 = vector.load %arg5[%c0_13, %c0_14] : memref<1x128xf32, #tpu.memory_space<vmem>>, vector<1x128xf32>
      %15 = vector.broadcast %14 : vector<1x128xf32> to vector<9x128xf32>
      %16 = arith.addf %13, %15 : vector<9x128xf32>
      %cst_15 = arith.constant dense<0.000000e+00> : vector<128xf32>
      %17 = vector.multi_reduction <add>, %16, %cst_15 [0] : vector<9x128xf32> to vector<128xf32>
      %18 = vector.shape_cast %17 : vector<128xf32> to vector<1x128xf32>
      %cst_16 = arith.constant 9.000000e+00 : f32
      %19 = vector.broadcast %cst_16 : f32 to vector<1x128xf32>
      %20 = arith.divf %18, %19 : vector<1x128xf32>
      %21 = vector.broadcast %20 : vector<1x128xf32> to vector<9x128xf32>
      %22 = arith.subf %16, %21 : vector<9x128xf32>
      %23 = arith.mulf %22, %22 : vector<9x128xf32>
      %cst_17 = arith.constant dense<0.000000e+00> : vector<128xf32>
      %24 = vector.multi_reduction <add>, %23, %cst_17 [0] : vector<9x128xf32> to vector<128xf32>
      %25 = vector.shape_cast %24 : vector<128xf32> to vector<1x128xf32>
      %cst_18 = arith.constant 9.000000e+00 : f32
      %26 = vector.broadcast %cst_18 : f32 to vector<1x128xf32>
      %27 = arith.divf %25, %26 : vector<1x128xf32>
      %28 = vector.broadcast %20 : vector<1x128xf32> to vector<9x128xf32>
      %29 = arith.subf %16, %28 : vector<9x128xf32>
      %cst_19 = arith.constant 9.99999971E-10 : f32
      %30 = vector.broadcast %cst_19 : f32 to vector<1x128xf32>
      %31 = arith.addf %27, %30 : vector<1x128xf32>
      %32 = math.rsqrt %31 : vector<1x128xf32>
      %33 = vector.broadcast %32 : vector<1x128xf32> to vector<9x128xf32>
      %34 = arith.mulf %29, %33 : vector<9x128xf32>
      %c0_20 = arith.constant 0 : index
      %c0_21 = arith.constant 0 : index
      %35 = vector.load %arg6[%c0_20, %c0_21] : memref<1x128xf32, #tpu.memory_space<vmem>>, vector<1x128xf32>
      %36 = vector.broadcast %35 : vector<1x128xf32> to vector<9x128xf32>
      %37 = arith.mulf %34, %36 : vector<9x128xf32>
      %c0_22 = arith.constant 0 : index
      %c0_23 = arith.constant 0 : index
      %38 = vector.load %arg7[%c0_22, %c0_23] : memref<1x128xf32, #tpu.memory_space<vmem>>, vector<1x128xf32>
      %39 = vector.broadcast %38 : vector<1x128xf32> to vector<9x128xf32>
      %40 = arith.addf %37, %39 : vector<9x128xf32>
      %cst_24 = arith.constant 0.000000e+00 : f32
      %41 = vector.broadcast %cst_24 : f32 to vector<9x128xf32>
      %42 = arith.cmpf ogt, %40, %41 : vector<9x128xf32>
      %cst_25 = arith.constant 2.000000e-01 : f32
      %43 = vector.broadcast %cst_25 : f32 to vector<9x128xf32>
      %44 = arith.mulf %43, %40 : vector<9x128xf32>
      %45 = arith.select %42, %40, %44 : vector<9x128xi1>, vector<9x128xf32>
      %46 = arith.truncf %45 : vector<9x128xf32> to vector<9x128xbf16>
      %c0_26 = arith.constant 0 : index
      %c0_27 = arith.constant 0 : index
      %c0_28 = arith.constant 0 : index
      %47 = vector.load %arg8[%c0_26, %c0_27, %c0_28] : memref<1x9x128xbf16, #tpu.memory_space<vmem>>, vector<1x9x128xbf16>
      %48 = vector.shape_cast %47 : vector<1x9x128xbf16> to vector<9x128xbf16>
      %49 = vector.shape_cast %46 : vector<9x128xbf16> to vector<1x9x128xbf16>
      tpu.vector_store %arg8[%c0_26, %c0_27, %c0_28], %49 {strides = array<i32>} : memref<1x9x128xbf16, #tpu.memory_space<vmem>>, vector<1x9x128xbf16>,
    } else {
    }
    return
  }
  func.func @transform_0(%arg0: i32, %arg1: i32, %arg2: i32) -> (i32, i32, i32) {
    %c0_i32 = arith.constant 0 : i32
    return %arg0, %arg1, %arg2 : i32, i32, i32
  }
  func.func @transform_1(%arg0: i32, %arg1: i32, %arg2: i32) -> (i32, i32) {
    %c0_i32 = arith.constant 0 : i32
    %c0_i32_0 = arith.constant 0 : i32
    return %arg2, %c0_i32 : i32, i32
  }
  func.func @transform_2(%arg0: i32, %arg1: i32, %arg2: i32) -> (i32, i32) {
    %c0_i32 = arith.constant 0 : i32
    %c0_i32_0 = arith.constant 0 : i32
    %c0_i32_1 = arith.constant 0 : i32
    return %c0_i32, %c0_i32_0 : i32, i32
  }
  func.func @transform_3(%arg0: i32, %arg1: i32, %arg2: i32) -> (i32, i32) {
    %c0_i32 = arith.constant 0 : i32
    %c0_i32_0 = arith.constant 0 : i32
    %c0_i32_1 = arith.constant 0 : i32
    return %c0_i32, %c0_i32_0 : i32, i32
  }
  func.func @transform_4(%arg0: i32, %arg1: i32, %arg2: i32) -> (i32, i32) {
    %c0_i32 = arith.constant 0 : i32
    %c0_i32_0 = arith.constant 0 : i32
    %c0_i32_1 = arith.constant 0 : i32
    return %c0_i32, %c0_i32_0 : i32, i32
  }
  func.func @transform_5(%arg0: i32, %arg1: i32, %arg2: i32) -> (i32, i32, i32) {
    %c0_i32 = arith.constant 0 : i32
    %c0_i32_0 = arith.constant 0 : i32
    return %arg0, %arg1, %c0_i32 : i32, i32, i32
  }
}

module attributes {stable_mosaic.version = 11 : i64} {
  func.func @_conv_layer_kernel(%arg0: i32, %arg1: i32, %arg2: i32, %arg3: memref<1x4x512xbf16, #tpu.memory_space<vmem>>, %arg4: memref<512x128xbf16, #tpu.memory_space<vmem>>, %arg5: memref<1x128xf32, #tpu.memory_space<vmem>>, %arg6: memref<1x128xf32, #tpu.memory_space<vmem>>, %arg7: memref<1x128xf32, #tpu.memory_space<vmem>>, %arg8: memref<1x4x128xf32, #tpu.memory_space<vmem>>, %arg9: memref<4x128xf32, #tpu.memory_space<vmem>>) attributes {dimension_semantics = [#tpu.dimension_semantics<parallel>, #tpu.dimension_semantics<parallel>, #tpu.dimension_semantics<arbitrary>], iteration_bounds = array<i64: 2, 1, 1>, scalar_prefetch = 0 : i64, scratch_operands = 1 : i64, tpu.core_type = #tpu.core_type<tc>, window_params = [{transform_indices = @transform_0, window_bounds = array<i64: 1, 4, 512>}, {transform_indices = @transform_1, window_bounds = array<i64: 512, 128>}, {pipeline_mode = #tpu.pipeline_mode<synchronous>, transform_indices = @transform_2, window_bounds = array<i64: 1, 128>}, {pipeline_mode = #tpu.pipeline_mode<synchronous>, transform_indices = @transform_3, window_bounds = array<i64: 1, 128>}, {pipeline_mode = #tpu.pipeline_mode<synchronous>, transform_indices = @transform_4, window_bounds = array<i64: 1, 128>}, {transform_indices = @transform_5, window_bounds = array<i64: 1, 4, 128>}]} {
    %c0_i32 = arith.constant 0 : i32
    %0 = arith.cmpi eq, %arg2, %c0_i32 : i32
    %1 = arith.extui %0 : i1 to i32
    %c0_i32_0 = arith.constant 0 : i32
    %2 = arith.cmpi ne, %1, %c0_i32_0 : i32
    scf.if %2 {
      %cst_11 = arith.constant 0.000000e+00 : f32
      %13 = vector.broadcast %cst_11 : f32 to vector<4x128xf32>
      %c0_12 = arith.constant 0 : index
      %c0_13 = arith.constant 0 : index
      %14 = vector.load %arg9[%c0_12, %c0_13] : memref<4x128xf32, #tpu.memory_space<vmem>>, vector<4x128xf32>
      tpu.vector_store %arg9[%c0_12, %c0_13], %13 {strides = array<i32>} : memref<4x128xf32, #tpu.memory_space<vmem>>, vector<4x128xf32>,
    } else {
    }
    %c0 = arith.constant 0 : index
    %c0_1 = arith.constant 0 : index
    %3 = vector.load %arg9[%c0, %c0_1] : memref<4x128xf32, #tpu.memory_space<vmem>>, vector<4x128xf32>
    %c0_2 = arith.constant 0 : index
    %c0_3 = arith.constant 0 : index
    %c0_4 = arith.constant 0 : index
    %4 = vector.load %arg3[%c0_2, %c0_3, %c0_4] : memref<1x4x512xbf16, #tpu.memory_space<vmem>>, vector<1x4x512xbf16>
    %5 = vector.shape_cast %4 : vector<1x4x512xbf16> to vector<4x512xbf16>
    %c0_5 = arith.constant 0 : index
    %c0_6 = arith.constant 0 : index
    %6 = vector.load %arg4[%c0_5, %c0_6] : memref<512x128xbf16, #tpu.memory_space<vmem>>, vector<512x128xbf16>
    %cst = arith.constant dense<0.000000e+00> : vector<4x128xf32>
    %7 = tpu.matmul %5, %6, %cst {dimension_numbers = #tpu.dot_dimension_numbers<[1], [0], [0], [1], [0, 0, 1, 1], [], []>} : vector<4x512xbf16>, vector<512x128xbf16>, vector<4x128xf32> -> vector<4x128xf32>
    %8 = arith.addf %3, %7 : vector<4x128xf32>
    %c0_7 = arith.constant 0 : index
    %c0_8 = arith.constant 0 : index
    %9 = vector.load %arg9[%c0_7, %c0_8] : memref<4x128xf32, #tpu.memory_space<vmem>>, vector<4x128xf32>
    tpu.vector_store %arg9[%c0_7, %c0_8], %8 {strides = array<i32>} : memref<4x128xf32, #tpu.memory_space<vmem>>, vector<4x128xf32>,
    %c0_i32_9 = arith.constant 0 : i32
    %10 = arith.cmpi eq, %arg2, %c0_i32_9 : i32
    %11 = arith.extui %10 : i1 to i32
    %c0_i32_10 = arith.constant 0 : i32
    %12 = arith.cmpi ne, %11, %c0_i32_10 : i32
    scf.if %12 {
      %c0_11 = arith.constant 0 : index
      %c0_12 = arith.constant 0 : index
      %13 = vector.load %arg9[%c0_11, %c0_12] : memref<4x128xf32, #tpu.memory_space<vmem>>, vector<4x128xf32>
      %c0_13 = arith.constant 0 : index
      %c0_14 = arith.constant 0 : index
      %14 = vector.load %arg5[%c0_13, %c0_14] : memref<1x128xf32, #tpu.memory_space<vmem>>, vector<1x128xf32>
      %15 = vector.broadcast %14 : vector<1x128xf32> to vector<4x128xf32>
      %16 = arith.addf %13, %15 : vector<4x128xf32>
      %cst_15 = arith.constant 0.000000e+00 : f32
      %17 = vector.broadcast %cst_15 : f32 to vector<4x128xf32>
      %18 = arith.subf %17, %16 : vector<4x128xf32>
      %19 = math.exp %18 : vector<4x128xf32>
      %cst_16 = arith.constant 1.000000e+00 : f32
      %20 = vector.broadcast %cst_16 : f32 to vector<4x128xf32>
      %21 = arith.addf %20, %19 : vector<4x128xf32>
      %cst_17 = arith.constant 1.000000e+00 : f32
      %22 = vector.broadcast %cst_17 : f32 to vector<4x128xf32>
      %23 = arith.divf %22, %21 : vector<4x128xf32>
      %c0_18 = arith.constant 0 : index
      %c0_19 = arith.constant 0 : index
      %c0_20 = arith.constant 0 : index
      %24 = vector.load %arg8[%c0_18, %c0_19, %c0_20] : memref<1x4x128xf32, #tpu.memory_space<vmem>>, vector<1x4x128xf32>
      %25 = vector.shape_cast %24 : vector<1x4x128xf32> to vector<4x128xf32>
      %26 = vector.shape_cast %23 : vector<4x128xf32> to vector<1x4x128xf32>
      tpu.vector_store %arg8[%c0_18, %c0_19, %c0_20], %26 {strides = array<i32>} : memref<1x4x128xf32, #tpu.memory_space<vmem>>, vector<1x4x128xf32>,
    } else {
    }
    return
  }
  func.func @transform_0(%arg0: i32, %arg1: i32, %arg2: i32) -> (i32, i32, i32) {
    %c0_i32 = arith.constant 0 : i32
    return %arg0, %arg1, %arg2 : i32, i32, i32
  }
  func.func @transform_1(%arg0: i32, %arg1: i32, %arg2: i32) -> (i32, i32) {
    %c0_i32 = arith.constant 0 : i32
    %c0_i32_0 = arith.constant 0 : i32
    return %arg2, %c0_i32 : i32, i32
  }
  func.func @transform_2(%arg0: i32, %arg1: i32, %arg2: i32) -> (i32, i32) {
    %c0_i32 = arith.constant 0 : i32
    %c0_i32_0 = arith.constant 0 : i32
    %c0_i32_1 = arith.constant 0 : i32
    return %c0_i32, %c0_i32_0 : i32, i32
  }
  func.func @transform_3(%arg0: i32, %arg1: i32, %arg2: i32) -> (i32, i32) {
    %c0_i32 = arith.constant 0 : i32
    %c0_i32_0 = arith.constant 0 : i32
    %c0_i32_1 = arith.constant 0 : i32
    return %c0_i32, %c0_i32_0 : i32, i32
  }
  func.func @transform_4(%arg0: i32, %arg1: i32, %arg2: i32) -> (i32, i32) {
    %c0_i32 = arith.constant 0 : i32
    %c0_i32_0 = arith.constant 0 : i32
    %c0_i32_1 = arith.constant 0 : i32
    return %c0_i32, %c0_i32_0 : i32, i32
  }
  func.func @transform_5(%arg0: i32, %arg1: i32, %arg2: i32) -> (i32, i32, i32) {
    %c0_i32 = arith.constant 0 : i32
    %c0_i32_0 = arith.constant 0 : i32
    return %arg0, %arg1, %c0_i32 : i32, i32, i32
  }
}

</mosaic_0001>

<bundles_post_ra>
// kernel: discriminator_forward.4
= control target key start
LH: loop header
LB: loop body
LE: loop exit
PB: predicated region body
PF: predicated region fallthrough
CT: control target
= control target key end

     0   :  { %s908_s18 = smov 0   ;;  %s910_s19 = smov 0   ;;  %s983_s0 = inlined_call_operand.vmem [shape: bf16[2,64,128], index: 0, kind: input, shape index: {}]   ;;  %s984_s1 = inlined_call_operand.vmem [shape: bf16[128,128], index: 1, kind: input, shape index: {}]   ;;  %s985_s2 = inlined_call_operand.vmem [shape: f32[1,128], index: 2, kind: input, shape index: {}]   ;;  %s986_s3 = inlined_call_operand.vmem [shape: f32[1,128], index: 3, kind: input, shape index: {}]   ;;  %s987_s4 = inlined_call_operand.vmem [shape: f32[1,128], index: 4, kind: input, shape index: {}]   ;;  %s988_s5 = inlined_call_operand.vmem [shape: bf16[2,64,128], index: 5, kind: output, shape index: {}]  }
   0x1   :  { %s912_s20 = smov 0  }
   0x2 LB: > { %s34_s3 = sadd.s32 1, %s872_s19  ;;  %p705_p0 = scmp.ge.s32.totalorder %s876_s20, 1  ;;  %s876_s20 = sphi %s912_s20, %s15_s20   ;;  %s872_s19 = sphi %s910_s19, %s990_s19   ;;  %s868_s18 = sphi %s908_s18, %s989_s18  }
   0x3   : > { %p36_p1 = scmp.ge.s32.totalorder %s34_s3, 2  ;;  %p231_p2 = scmp.lt.s32.totalorder %s876_s20, 3 }
   0x5   : > { %s992_s3 = smov (%p36_p1, %s34_s3), 0  ;;  %p232_p3 = pnand %p705_p0, %p231_p2 }
   0x6   : > { %v842_v0 = vld [vmem:[%s984_s1] sm:$0xff] (!%p232_p3)   ;;  %p276_p4 = scmp.lt.s32.totalorder (!%p232_p3), %s868_s18, 1  ;;  %v843_v1 = vld [vmem:[%s984_s1 + $0x8] sm:$0xff] (!%p232_p3)   ;;  %v844_v2 = vld [vmem:[%s984_s1 + $0x10] sm:$0xff] (!%p232_p3)  }
   0x7   : > { %235 = sbr.rel (%p232_p3) target bundleno = 264 (0x108), region = 40  ;;  %778 = vmatprep.subr.bf16.mxu0 (!%p232_p3), %v842_v0  ;;  %802 = vmatprep.subr.bf16.mxu1 (!%p232_p3), %v842_v0  ;;  %v845_v3 = vld [vmem:[%s984_s1 + $0x18] sm:$0xff] (!%p232_p3)   ;;  %v846_v6 = vld [vmem:[%s984_s1 + $0x20] sm:$0xff] (!%p232_p3)   ;;  %v847_v7 = vld [vmem:[%s984_s1 + $0x28] sm:$0xff] (!%p232_p3)  }
   0x8   : > { %779 = vmatpush3.bf16.msra.mxu0 (!%p232_p3), %v842_v0  ;;  %810 = vmatpush3.bf16.msra.mxu1 (!%p232_p3), %v842_v0  ;;  %v848_v8 = vld [vmem:[%s984_s1 + $0x30] sm:$0xff] (!%p232_p3)   ;;  %v849_v9 = vld [vmem:[%s984_s1 + $0x38] sm:$0xff] (!%p232_p3)   ;;  %v722_v12 = vld [vmem:[%s985_s2] ss:$0 sm:$0xff] (!%p232_p3) }
   0x9   : > { %780 = vmatprep.subr.bf16.mxu0 (!%p232_p3), %v843_v1  ;;  %803 = vmatprep.subr.bf16.mxu1 (!%p232_p3), %v843_v1 }
   0xc   : > { %781 = vmatpush3.bf16.msra.mxu0 (!%p232_p3), %v843_v1  ;;  %811 = vmatpush3.bf16.msra.mxu1 (!%p232_p3), %v843_v1 }
   0xd   : > { %782 = vmatprep.subr.bf16.mxu0 (!%p232_p3), %v844_v2  ;;  %804 = vmatprep.subr.bf16.mxu1 (!%p232_p3), %v844_v2 }
   0xe   : > { %s994_s18 = smov (!%p276_p4, %s868_s18), 1 }
   0xf   : > { %s733_s26 = sshll.u32 %s994_s18, 5 }
  0x10   : > { %s943_s29 = scalar_lea.vmem %s983_s0, %s733_s26  ;;  %783 = vmatpush3.bf16.msra.mxu0 %v844_v2  ;;  %812 = vmatpush3.bf16.msra.mxu1 %v844_v2  ;;  %s302_s21 = scalar_lea.vmem %s988_s5, %s733_s26 }
  0x11   : > { %v850_v4 = vld [vmem:[%s943_s29] sm:$0xff]   ;;  %v851_v5 = vld [vmem:[%s943_s29 + $0x10] sm:$0xff]   ;;  %784 = vmatprep.subr.bf16.mxu0 %v845_v3  ;;  %805 = vmatprep.subr.bf16.mxu1 %v845_v3  ;;  %v852_v10 = vld [vmem:[%s943_s29 + $0x8] sm:$0xff]  }
  0x12   : > { %794 = vmatprep.mubr.bf16.mxu0 %v850_v4  ;;  %798 = vmatprep.mubr.bf16.mxu1 %v851_v5  ;;  %v853_v11 = vld [vmem:[%s943_s29 + $0x18] sm:$0xff]  }
  0x14   : > { %785 = vmatpush3.bf16.msra.mxu0 %v845_v3  ;;  %813 = vmatpush3.bf16.msra.mxu1 %v845_v3 }
  0x15   : > { %786 = vmatprep.subr.bf16.mxu0 %v846_v6  ;;  %806 = vmatprep.subr.bf16.mxu1 %v846_v6 }
  0x18   : > { %787 = vmatpush3.bf16.msra.mxu0 %v846_v6  ;;  %814 = vmatpush3.bf16.msra.mxu1 %v846_v6 }
  0x19   : > { %788 = vmatprep.subr.bf16.mxu0 %v847_v7  ;;  %807 = vmatprep.subr.bf16.mxu1 %v847_v7 }
  0x1c   : > { %789 = vmatpush3.bf16.msra.mxu0 %v847_v7  ;;  %815 = vmatpush3.bf16.msra.mxu1 %v847_v7 }
  0x1d   : > { %790 = vmatprep.subr.bf16.mxu0 %v848_v8  ;;  %808 = vmatprep.subr.bf16.mxu1 %v848_v8 }
  0x20   : > { %791 = vmatpush3.bf16.msra.mxu0 %v848_v8  ;;  %816 = vmatpush3.bf16.msra.mxu1 %v848_v8 }
  0x21   : > { %792 = vmatprep.subr.bf16.mxu0 %v849_v9  ;;  %809 = vmatprep.subr.bf16.mxu1 %v849_v9 }
  0x24   : > { %793 = vmatpush3.bf16.msra.mxu0 %v849_v9  ;;  %817 = vmatpush3.bf16.msra.mxu1 %v849_v9 }
  0x27   : > { %795 = vmatmul.mubr.bf16.vlgmr.msra.gmra.mrb[0].mxu0 %v852_v10  ;;  %799 = vmatmul.mubr.bf16.vlgmr.msra.gmra.mrb[0].mxu1 %v853_v11 }
  0xfa   : > { %v796_v13 = vpop.f32.mrb[0].mxu0  ;;  %v800_v14 = vpop.f32.mrb[0].mxu1 }
  0xfb   : > { %v522_v15 = vadd.f32 %v796_v13, %v722_v12  ;;  %v526_v16 = vadd.f32 %v800_v14, %v722_v12  ;;  %v455_v17 = vpop.f32.mrb[1].mxu0  ;;  %v471_v18 = vpop.f32.mrb[1].mxu1 }
  0xfc   : > { %v520_v19 = vadd.f32 %v722_v12, %v455_v17  ;;  %v524_v20 = vadd.f32 %v722_v12, %v471_v18  ;;  %v797_v21 = vpop.f32.mrb[2].mxu0  ;;  %v801_v22 = vpop.f32.mrb[2].mxu1 }
  0xfd   : > { %vm530_vm0 = vcmp.gt.f32.partialorder %v522_v15, 0.0  ;;  %v538_v23 = vmul.f32 0.2, %v522_v15  ;;  %vm534_vm1 = vcmp.gt.f32.partialorder %v526_v16, 0.0  ;;  %v542_v24 = vmul.f32 0.2, %v526_v16 }
  0xfe   : > { %vm528_vm2 = vcmp.gt.f32.partialorder %v520_v19, 0.0  ;;  %v536_v25 = vmul.f32 0.2, %v520_v19  ;;  %vm532_vm3 = vcmp.gt.f32.partialorder %v524_v20, 0.0  ;;  %v540_v26 = vmul.f32 0.2, %v524_v20 }
  0xff   : > { %v523_v27 = vadd.f32 %v797_v21, %v722_v12  ;;  %v527_v28 = vadd.f32 %v801_v22, %v722_v12  ;;  %v458_v29 = vpop.f32.mrb[3].mxu0  ;;  %v474_v30 = vpop.f32.mrb[3].mxu1  ;;  %v546_v31 = vsel %vm530_vm0, %v522_v15, %v538_v23  ;;  %v550_v32 = vsel %vm534_vm1, %v526_v16, %v542_v24 }
 0x100   : > { %v521_v33 = vadd.f32 %v722_v12, %v458_v29  ;;  %v525_v34 = vadd.f32 %v722_v12, %v474_v30  ;;  %v544_v39 = vsel %vm528_vm2, %v520_v19, %v536_v25  ;;  %v548_v40 = vsel %vm532_vm3, %v524_v20, %v540_v26 }
 0x101   : > { %vm531_vm4 = vcmp.gt.f32.partialorder %v523_v27, 0.0  ;;  %v539_v35 = vmul.f32 0.2, %v523_v27  ;;  %vm535_vm5 = vcmp.gt.f32.partialorder %v527_v28, 0.0  ;;  %v543_v36 = vmul.f32 0.2, %v527_v28 }
 0x102   : > { %vm529_vm6 = vcmp.gt.f32.partialorder %v521_v33, 0.0  ;;  %v537_v37 = vmul.f32 0.2, %v521_v33  ;;  %vm533_vm7 = vcmp.gt.f32.partialorder %v525_v34, 0.0  ;;  %v541_v38 = vmul.f32 0.2, %v525_v34 }
 0x103   : > { %v547_v41 = vsel %vm531_vm4, %v523_v27, %v539_v35  ;;  %v551_v42 = vsel %vm535_vm5, %v527_v28, %v543_v36 }
 0x104   : > { %v751_v43 = vpack.c.bf16 %v547_v41, %v546_v31  ;;  %v761_v44 = vpack.c.bf16 %v551_v42, %v550_v32  ;;  %v545_v45 = vsel %vm529_vm6, %v521_v33, %v537_v37  ;;  %v549_v46 = vsel %vm533_vm7, %v525_v34, %v541_v38 }
 0x105   : > { %v746_v47 = vpack.c.bf16 %v545_v45, %v544_v39  ;;  %v756_v48 = vpack.c.bf16 %v549_v46, %v548_v40 }
 0x106   : > { %763 = vst [vmem:[%s302_s21 + $0x8] sm:$0xff] %v751_v43   ;;  %765 = vst [vmem:[%s302_s21 + $0x18] sm:$0xff] %v761_v44  }
 0x107   : > { %747 = vst [vmem:[%s302_s21] sm:$0xff] %v746_v47   ;;  %764 = vst [vmem:[%s302_s21 + $0x10] sm:$0xff] %v756_v48  }
 0x108 PF: > { %s15_s20 = sadd.s32 1, %s876_s20   ;;  %s989_s18 = smov %s872_s19 }
 0x109   : > { %p12_p5 = scmp.ge.s32.totalorder %s15_s20, 4   ;;  %s990_s19 = smov %s992_s3 }
 0x10b   :  { %14 = sbr.rel (!%p12_p5) target bundleno = 2 (0x2), region = 81 }

// kernel: discriminator_forward.5
= control target key start
LH: loop header
LB: loop body
LE: loop exit
PB: predicated region body
PF: predicated region fallthrough
CT: control target
= control target key end

     0   :  { %s768_s18 = smov 0   ;;  %s770_s19 = smov 0   ;;  %s841_s0 = inlined_call_operand.vmem [shape: bf16[2,16,128], index: 0, kind: input, shape index: {}]   ;;  %s842_s1 = inlined_call_operand.vmem [shape: bf16[128,128], index: 1, kind: input, shape index: {}]   ;;  %s843_s2 = inlined_call_operand.vmem [shape: f32[1,128], index: 2, kind: input, shape index: {}]   ;;  %s844_s3 = inlined_call_operand.vmem [shape: f32[1,128], index: 3, kind: input, shape index: {}]   ;;  %s845_s4 = inlined_call_operand.vmem [shape: f32[1,128], index: 4, kind: input, shape index: {}]   ;;  %s846_s5 = inlined_call_operand.vmem [shape: bf16[2,16,128], index: 5, kind: output, shape index: {}]  }
   0x1   :  { %s772_s20 = smov 0  }
   0x2 LB: > { %s34_s21 = sadd.s32 1, %s730_s19  ;;  %p616_p0 = scmp.ge.s32.totalorder %s734_s20, 1  ;;  %s734_s20 = sphi %s772_s20, %s15_s20   ;;  %s730_s19 = sphi %s770_s19, %s848_s19   ;;  %s726_s18 = sphi %s768_s18, %s847_s18  }
   0x3   : > { %p36_p1 = scmp.ge.s32.totalorder %s34_s21, 2  ;;  %p231_p2 = scmp.lt.s32.totalorder %s734_s20, 3 }
   0x5   : > { %s850_s21 = smov (%p36_p1, %s34_s21), 0  ;;  %p232_p3 = pnand %p616_p0, %p231_p2 }
   0x6   : > { %v701_v0 = vld [vmem:[%s842_s1] sm:$0xff] (!%p232_p3)   ;;  %v736_v1 = vmov (!%p232_p3), 0.0   ;;  %v702_v2 = vld [vmem:[%s842_s1 + $0x8] sm:$0xff] (!%p232_p3)   ;;  %vm737_vm0 = vmmov (!%p232_p3), 0   ;;  %p276_p4 = scmp.lt.s32.totalorder (!%p232_p3), %s726_s18, 1  ;;  %v703_v3 = vld [vmem:[%s842_s1 + $0x10] sm:$0xff] (!%p232_p3)  }
   0x7   : > { %235 = sbr.rel (%p232_p3) target bundleno = 316 (0x13c), region = 40  ;;  %655 = vmatprep.subr.bf16.mxu0 (!%p232_p3), %v736_v1  ;;  %671 = vmatprep.mubr.msk.bf16.mxu0 (!%p232_p3), %vm737_vm0, %v736_v1  ;;  %v704_v4 = vld [vmem:[%s842_s1 + $0x18] sm:$0xff] (!%p232_p3)   ;;  %v705_v5 = vld [vmem:[%s842_s1 + $0x20] sm:$0xff] (!%p232_p3)   ;;  %v706_v6 = vld [vmem:[%s842_s1 + $0x28] sm:$0xff] (!%p232_p3)  }
   0x8   : > { %656 = vmatpush3.bf16.msra.mxu0 (!%p232_p3), %v701_v0  ;;  %v707_v7 = vld [vmem:[%s842_s1 + $0x30] sm:$0xff] (!%p232_p3)   ;;  %v708_v8 = vld [vmem:[%s842_s1 + $0x38] sm:$0xff] (!%p232_p3)   ;;  %v630_v11 = vld [vmem:[%s843_s2] ss:$0 sm:$0xff] (!%p232_p3) }
   0x9   : > { %657 = vmatprep.subr.bf16.mxu0 (!%p232_p3), %v736_v1  ;;  %v631_v39 = vld [vmem:[%s844_s3] ss:$0 sm:$0xff] (!%p232_p3) }
   0xa   : > { %v632_v42 = vld [vmem:[%s845_s4] ss:$0 sm:$0xff] (!%p232_p3) }
   0xc   : > { %658 = vmatpush3.bf16.msra.mxu0 (!%p232_p3), %v702_v2 }
   0xd   : > { %659 = vmatprep.subr.bf16.mxu0 (!%p232_p3), %v736_v1 }
   0xe   : > { %s852_s18 = smov (!%p276_p4, %s726_s18), 1 }
   0xf   : > { %s637_s28 = sshll.u32 %s852_s18, 3 }
  0x10   : > { %s286_s6 = scalar_lea.vmem %s841_s0, %s637_s28  ;;  %660 = vmatpush3.bf16.msra.mxu0 %v703_v3  ;;  %s302_s30 = scalar_lea.vmem %s846_s5, %s637_s28 }
  0x11   : > { %661 = vmatprep.subr.bf16.mxu0 %v736_v1  ;;  %v709_v9 = vld [vmem:[%s286_s6] sm:$0xff]  }
  0x14   : > { %662 = vmatpush3.bf16.msra.mxu0 %v704_v4 }
  0x15   : > { %663 = vmatprep.subr.bf16.mxu0 %v736_v1 }
  0x18   : > { %664 = vmatpush3.bf16.msra.mxu0 %v705_v5 }
  0x19   : > { %665 = vmatprep.subr.bf16.mxu0 %v736_v1 }
  0x1c   : > { %666 = vmatpush3.bf16.msra.mxu0 %v706_v6 }
  0x1d   : > { %667 = vmatprep.subr.bf16.mxu0 %v736_v1 }
  0x20   : > { %668 = vmatpush3.bf16.msra.mxu0 %v707_v7 }
  0x21   : > { %669 = vmatprep.subr.bf16.mxu0 %v736_v1 }
  0x24   : > { %670 = vmatpush3.bf16.msra.mxu0 %v708_v8 }
  0x27   : > { %672 = vmatmul.mubr.bf16.vlgmr.msra.gmra.mrb[0].mxu0 %v709_v9 }
  0xfa   : > { %v419_v10 = vpop.f32.mrb[0].mxu0 }
  0xfb   : > { %v673_v12 = vpop.f32.mrb[1].mxu0  ;;  %v442_v14 = vadd.f32 %v630_v11, %v419_v10 }
  0xfc   : > { %v422_v13 = vpop.f32.mrb[2].mxu0 }
  0xfd   : > { %v443_v15 = vadd.f32 %v630_v11, %v422_v13  ;;  %v674_v16 = vpop.f32.mrb[3].mxu0 }
  0xff   : > { %v444_v17 = vadd.f32 %v443_v15, %v442_v14 }
 0x101   : > { %v445_v18 = vrot.slane %v444_v17, 4 }
 0x103   : > { %v446_v19 = vadd.f32 %v445_v18, %v444_v17 }
 0x105   : > { %v447_v20 = vrot.slane %v446_v19, 2 }
 0x107   : > { %v448_v21 = vadd.f32 %v447_v20, %v446_v19 }
 0x109   : > { %v449_v22 = vrot.slane %v448_v21, 1 }
 0x10b   : > { %v450_v23 = vadd.f32 %v449_v22, %v448_v21 }
 0x10d   : > { %v452_v24 = vmul.f32 0.0625, %v450_v23 }
 0x10f   : > { %v453_v25 = vsub.f32 %v442_v14, %v452_v24  ;;  %v454_v26 = vsub.f32 %v443_v15, %v452_v24 }
 0x111   : > { %v455_v27 = vmul.f32 %v453_v25, %v453_v25  ;;  %v456_v28 = vmul.f32 %v454_v26, %v454_v26 }
 0x113   : > { %v457_v29 = vadd.f32 %v456_v28, %v455_v27 }
 0x115   : > { %v458_v30 = vrot.slane %v457_v29, 4 }
 0x117   : > { %v459_v31 = vadd.f32 %v458_v30, %v457_v29 }
 0x119   : > { %v460_v32 = vrot.slane %v459_v31, 2 }
 0x11b   : > { %v461_v33 = vadd.f32 %v460_v32, %v459_v31 }
 0x11d   : > { %v462_v34 = vrot.slane %v461_v33, 1 }
 0x11f   : > { %v463_v35 = vadd.f32 %v462_v34, %v461_v33 }
 0x121   : > { %v464_v36 = vmul.f32 0.0625, %v463_v35 }
 0x123   : > { %v465_v37 = vadd.f32 1e-09, %v464_v36 }
 0x125   : > { %710 = vrsqrt.f32 %v465_v37 }
 0x12f   : > { %v711_v38 = vpop.eup %710 }
 0x130   : > { %v467_v40 = vmul.f32 %v711_v38, %v453_v25  ;;  %v468_v41 = vmul.f32 %v711_v38, %v454_v26 }
 0x132   : > { %v476_v43 = vmul.f32 %v631_v39, %v467_v40  ;;  %v477_v44 = vmul.f32 %v631_v39, %v468_v41 }
 0x134   : > { %v485_v45 = vadd.f32 %v632_v42, %v476_v43  ;;  %v486_v46 = vadd.f32 %v632_v42, %v477_v44 }
 0x136   : > { %vm487_vm1 = vcmp.gt.f32.partialorder %v485_v45, 0.0  ;;  %vm488_vm2 = vcmp.gt.f32.partialorder %v486_v46, 0.0  ;;  %v489_v47 = vmul.f32 0.2, %v485_v45  ;;  %v490_v48 = vmul.f32 0.2, %v486_v46 }
 0x138   : > { %v491_v49 = vsel %vm487_vm1, %v485_v45, %v489_v47  ;;  %v492_v50 = vsel %vm488_vm2, %v486_v46, %v490_v48 }
 0x139   : > { %v644_v51 = vpack.c.bf16 %v492_v50, %v491_v49 }
 0x13b   : > { %645 = vst [vmem:[%s302_s30] sm:$0xff] %v644_v51  }
 0x13c PF: > { %s15_s20 = sadd.s32 1, %s734_s20   ;;  %s847_s18 = smov %s730_s19 }
 0x13d   : > { %p12_p5 = scmp.ge.s32.totalorder %s15_s20, 4   ;;  %s848_s19 = smov %s850_s21 }
 0x13f   :  { %14 = sbr.rel (!%p12_p5) target bundleno = 2 (0x2), region = 81 }

// kernel: discriminator_forward.6
= control target key start
LH: loop header
LB: loop body
LE: loop exit
PB: predicated region body
PF: predicated region fallthrough
CT: control target
= control target key end

     0   :  { %s860_s18 = smov 0   ;;  %s862_s19 = smov 0   ;;  %s957_s0 = inlined_call_operand.vmem [shape: bf16[2,9,256], index: 0, kind: input, shape index: {}]   ;;  %s958_s1 = inlined_call_operand.vmem [shape: bf16[256,128], index: 1, kind: input, shape index: {}]   ;;  %s959_s2 = inlined_call_operand.vmem [shape: f32[1,128], index: 2, kind: input, shape index: {}]   ;;  %s960_s3 = inlined_call_operand.vmem [shape: f32[1,128], index: 3, kind: input, shape index: {}]   ;;  %s961_s4 = inlined_call_operand.vmem [shape: f32[1,128], index: 4, kind: input, shape index: {}]   ;;  %s962_s5 = inlined_call_operand.vmem [shape: bf16[2,9,128], index: 5, kind: output, shape index: {}]  }
   0x1   :  { %s864_s20 = smov 0  }
   0x2 LB: > { %s34_s21 = sadd.s32 1, %s823_s19  ;;  %p703_p0 = scmp.ge.s32.totalorder %s827_s20, 1  ;;  %s827_s20 = sphi %s864_s20, %s15_s20   ;;  %s823_s19 = sphi %s862_s19, %s964_s19   ;;  %s819_s18 = sphi %s860_s18, %s963_s18  }
   0x3   : > { %p36_p1 = scmp.ge.s32.totalorder %s34_s21, 2  ;;  %p234_p2 = scmp.lt.s32.totalorder %s827_s20, 3 }
   0x5   : > { %s966_s21 = smov (%p36_p1, %s34_s21), 0  ;;  %p235_p3 = pnand %p703_p0, %p234_p2 }
   0x6   : > { %v784_v0 = vld [vmem:[%s958_s1 + $0x40] sm:$0xff] (!%p235_p3)   ;;  %v786_v2 = vld [vmem:[%s958_s1 + $0x48] sm:$0xff] (!%p235_p3)   ;;  %p282_p4 = scmp.lt.s32.totalorder (!%p235_p3), %s819_s18, 1  ;;  %v788_v4 = vld [vmem:[%s958_s1 + $0x50] sm:$0xff] (!%p235_p3)   ;;  %v829_v18 = vmov (!%p235_p3), 0.0   ;;  %vm520_vm0 = vcmask (!%p235_p3), 1040384  }
   0x7   : > { %238 = sbr.rel (%p235_p3) target bundleno = 332 (0x14c), region = 40  ;;  %v785_v1 = vld [vmem:[%s958_s1] sm:$0xff] (!%p235_p3)   ;;  %737 = vmatprep.subr.bf16.mxu0 (!%p235_p3), %v784_v0  ;;  %v787_v3 = vld [vmem:[%s958_s1 + $0x8] sm:$0xff] (!%p235_p3)   ;;  %v789_v5 = vld [vmem:[%s958_s1 + $0x10] sm:$0xff] (!%p235_p3)   ;;  %318 = vst [vmem:[#allocation2 + $0x8] sm:$0x1] (!%p235_p3), %v829_v18 }
   0x8   : > { %738 = vmatpush3.bf16.msra.mxu0 (!%p235_p3), %v785_v1  ;;  %v790_v6 = vld [vmem:[%s958_s1 + $0x58] sm:$0xff] (!%p235_p3)   ;;  %v792_v8 = vld [vmem:[%s958_s1 + $0x60] sm:$0xff] (!%p235_p3)   ;;  %v794_v10 = vld [vmem:[%s958_s1 + $0x68] sm:$0xff] (!%p235_p3)   ;;  %vm582_vm1 = vsmask.f32 (!%p235_p3), 256 }
   0x9   : > { %739 = vmatprep.subr.bf16.mxu0 (!%p235_p3), %v786_v2  ;;  %v791_v7 = vld [vmem:[%s958_s1 + $0x18] sm:$0xff] (!%p235_p3)   ;;  %v793_v9 = vld [vmem:[%s958_s1 + $0x20] sm:$0xff] (!%p235_p3)   ;;  %v795_v12 = vld [vmem:[%s958_s1 + $0x28] sm:$0xff] (!%p235_p3)  }
   0xa   : > { %v796_v13 = vld [vmem:[%s958_s1 + $0x70] sm:$0xff] (!%p235_p3)   ;;  %v798_v15 = vld [vmem:[%s958_s1 + $0x78] sm:$0xff] (!%p235_p3)   ;;  %v726_v27 = vld [vmem:[%s959_s2] ss:$0 sm:$0xff] (!%p235_p3) }
   0xb   : > { %v797_v14 = vld [vmem:[%s958_s1 + $0x30] sm:$0xff] (!%p235_p3)   ;;  %v799_v16 = vld [vmem:[%s958_s1 + $0x38] sm:$0xff] (!%p235_p3)   ;;  %v727_v55 = vld [vmem:[%s960_s3] ss:$0 sm:$0xff] (!%p235_p3) }
   0xc   : > { %740 = vmatpush3.bf16.msra.mxu0 (!%p235_p3), %v787_v3  ;;  %v728_v58 = vld [vmem:[%s961_s4] ss:$0 sm:$0xff] (!%p235_p3)  ;;  %vm583_vm4 = vmand (!%p235_p3), %vm520_vm0, %vm582_vm1 }
   0xd   : > { %741 = vmatprep.subr.bf16.mxu0 (!%p235_p3), %v788_v4 }
   0xe   : > { %s968_s18 = smov (!%p282_p4, %s819_s18), 1  ;;  %v320_v23 = vld [vmem:[#allocation2 + $0x8] sm:$0x1] }
   0xf   : > { %s733_s13 = sshll.u32 %s968_s18, 4 }
  0x10   : > { %742 = vmatpush3.bf16.msra.mxu0 %v789_v5  ;;  %s293_s22 = scalar_lea.vmem %s957_s0, %s733_s13 }
  0x11   : > { %743 = vmatprep.subr.bf16.mxu0 %v790_v6  ;;  %v802_v11 = vld [vmem:[%s293_s22 + $0x4] ss:$8 sps:$4 sm:$0x1f]   ;;  %v800_v17 = vld [vmem:[%s293_s22] ss:$8 sps:$4 sm:$0x1f]  }
  0x12   : > { %493 = vmatprep.mubr.bf16.mxu0 %v802_v11  ;;  %s734_s22 = sshll.u32 %s968_s18, 3 }
  0x13   : > { %s310_s25 = scalar_lea.vmem %s962_s5, %s734_s22 }
  0x14   : > { %744 = vmatpush3.bf16.msra.mxu0 %v791_v7  ;;  %v584_v1 = vld [vmem:[%s310_s25 + $0x4] sm:$0x1] }
  0x15   : > { %745 = vmatprep.subr.bf16.mxu0 %v792_v8 }
  0x18   : > { %746 = vmatpush3.bf16.msra.mxu0 %v793_v9 }
  0x19   : > { %747 = vmatprep.subr.bf16.mxu0 %v794_v10 }
  0x1c   : > { %748 = vmatpush3.bf16.msra.mxu0 %v795_v12 }
  0x1d   : > { %749 = vmatprep.subr.bf16.mxu0 %v796_v13 }
  0x20   : > { %750 = vmatpush3.bf16.msra.mxu0 %v797_v14 }
  0x21   : > { %751 = vmatprep.subr.bf16.mxu0 %v798_v15 }
  0x24   : > { %752 = vmatpush3.bf16.msra.mxu0 %v799_v16 }
  0x27   : > { %494 = vmatmul.mubr.bf16.vlgmr.msra.gmra.mrb[0].mxu0 %v800_v17 }
  0xfa   : > { %v753_v19 = vpop.f32.mrb[0].mxu0 }
  0xfb   : > { %v754_v20 = vpop.f32.mrb[1].mxu0 }
  0xfc   : > { %v755_v21 = vadd.f32 %v754_v20, %v753_v19  ;;  %v756_v22 = vpop.f32.mrb[2].mxu0 }
  0xfd   : > { %v757_v24 = vpop.f32.mrb[3].mxu0 }
  0xfe   : > { %v758_v25 = vadd.f32 %v757_v24, %v756_v22  ;;  %v518_v30 = vadd.f32 %v755_v21, %v726_v27 }
 0x100   : > { %v503_v26 = vadd.f32 %v758_v25, %v320_v23 }
 0x102   : > { %505 = vst [vmem:[#allocation2 + $0x8] sm:$0x1] %v503_v26 }
 0x109   : > { %v510_v28 = vld [vmem:[#allocation2 + $0x8] sm:$0x1] }
 0x10a   : > { %v519_v29 = vadd.f32 %v726_v27, %v510_v28 }
 0x10c   : > { %v521_v31 = vsel %vm520_vm0, %v519_v29, 0.0 }
 0x10d   : > { %v522_v32 = vadd.f32 %v521_v31, %v518_v30 }
 0x10f   : > { %v523_v33 = vrot.slane %v522_v32, 4 }
 0x111   : > { %v524_v34 = vadd.f32 %v523_v33, %v522_v32 }
 0x113   : > { %v525_v35 = vrot.slane %v524_v34, 2 }
 0x115   : > { %v526_v36 = vadd.f32 %v525_v35, %v524_v34 }
 0x117   : > { %v527_v37 = vrot.slane %v526_v36, 1 }
 0x119   : > { %v528_v38 = vadd.f32 %v527_v37, %v526_v36 }
 0x11b   : > { %v530_v39 = vmul.f32 0.11111111, %v528_v38 }
 0x11d   : > { %v531_v40 = vsub.f32 %v518_v30, %v530_v39  ;;  %v532_v41 = vsub.f32 %v519_v29, %v530_v39 }
 0x11f   : > { %v533_v42 = vmul.f32 %v531_v40, %v531_v40  ;;  %v534_v43 = vmul.f32 %v532_v41, %v532_v41 }
 0x121   : > { %v535_v44 = vsel %vm520_vm0, %v534_v43, 0.0 }
 0x122   : > { %v536_v45 = vadd.f32 %v535_v44, %v533_v42 }
 0x124   : > { %v537_v46 = vrot.slane %v536_v45, 4 }
 0x126   : > { %v538_v47 = vadd.f32 %v537_v46, %v536_v45 }
 0x128   : > { %v539_v48 = vrot.slane %v538_v47, 2 }
 0x12a   : > { %v540_v49 = vadd.f32 %v539_v48, %v538_v47 }
 0x12c   : > { %v541_v50 = vrot.slane %v540_v49, 1 }
 0x12e   : > { %v542_v51 = vadd.f32 %v541_v50, %v540_v49 }
 0x130   : > { %v543_v52 = vmul.f32 0.11111111, %v542_v51 }
 0x132   : > { %v544_v53 = vadd.f32 1e-09, %v543_v52 }
 0x134   : > { %803 = vrsqrt.f32 %v544_v53 }
 0x13e   : > { %v804_v54 = vpop.eup %803 }
 0x13f   : > { %v546_v56 = vmul.f32 %v804_v54, %v531_v40  ;;  %v547_v57 = vmul.f32 %v804_v54, %v532_v41 }
 0x141   : > { %v555_v59 = vmul.f32 %v727_v55, %v546_v56  ;;  %v556_v60 = vmul.f32 %v727_v55, %v547_v57 }
 0x143   : > { %v564_v61 = vadd.f32 %v728_v58, %v555_v59  ;;  %v565_v62 = vadd.f32 %v728_v58, %v556_v60 }
 0x145   : > { %vm566_vm2 = vcmp.gt.f32.partialorder %v564_v61, 0.0  ;;  %vm567_vm3 = vcmp.gt.f32.partialorder %v565_v62, 0.0  ;;  %v568_v63 = vmul.f32 0.2, %v564_v61  ;;  %v569_v0 = vmul.f32 0.2, %v565_v62 }
 0x147   : > { %v570_v2 = vsel %vm566_vm2, %v564_v61, %v568_v63  ;;  %v571_v3 = vsel %vm567_vm3, %v565_v62, %v569_v0 }
 0x148   : > { %v735_v4 = vpack.c.bf16 %v570_v2, %v570_v2  ;;  %v736_v5 = vpack.c.bf16 %v571_v3, %v571_v3 }
 0x14a   : > { %580 = vst [vmem:[%s310_s25] sm:$0xf] %v735_v4  ;;  %v585_v6 = vsel %vm583_vm4, %v736_v5, %v584_v1 }
 0x14b   : > { %586 = vst [vmem:[%s310_s25 + $0x4] sm:$0x1] %v585_v6 }
 0x14c PF: > { %s15_s20 = sadd.s32 1, %s827_s20   ;;  %s963_s18 = smov %s823_s19 }
 0x14d   : > { %p12_p5 = scmp.ge.s32.totalorder %s15_s20, 4   ;;  %s964_s19 = smov %s966_s21 }
 0x14f   :  { %14 = sbr.rel (!%p12_p5) target bundleno = 2 (0x2), region = 81 }

// kernel: discriminator_forward.7
= control target key start
LH: loop header
LB: loop body
LE: loop exit
PB: predicated region body
PF: predicated region fallthrough
CT: control target
= control target key end

     0   :  { %s999_s18 = smov 0   ;;  %s1001_s19 = smov 0   ;;  %s1139_s0 = inlined_call_operand.vmem [shape: bf16[2,4,512], index: 0, kind: input, shape index: {}]   ;;  %s1140_s1 = inlined_call_operand.vmem [shape: bf16[512,128], index: 1, kind: input, shape index: {}]   ;;  %s1141_s2 = inlined_call_operand.vmem [shape: f32[1,128], index: 2, kind: input, shape index: {}]   ;;  %s1142_s3 = inlined_call_operand.vmem [shape: f32[1,128], index: 3, kind: input, shape index: {}]   ;;  %s1143_s4 = inlined_call_operand.vmem [shape: f32[1,128], index: 4, kind: input, shape index: {}]   ;;  %s1144_s5 = inlined_call_operand.vmem [shape: f32[2,4,128], index: 5, kind: output, shape index: {}]  }
   0x1   :  { %s1003_s20 = smov 0  }
   0x2 LB: > { %s34_s3 = sadd.s32 1, %s961_s19  ;;  %p796_p0 = scmp.ge.s32.totalorder %s965_s20, 1  ;;  %s965_s20 = sphi %s1003_s20, %s15_s20   ;;  %s961_s19 = sphi %s1001_s19, %s1146_s19   ;;  %s957_s18 = sphi %s999_s18, %s1145_s18  }
   0x3   : > { %p36_p1 = scmp.ge.s32.totalorder %s34_s3, 2  ;;  %p232_p2 = scmp.lt.s32.totalorder %s965_s20, 3 }
   0x5   : > { %s1148_s3 = smov (%p36_p1, %s34_s3), 0  ;;  %p233_p3 = pnand %p796_p0, %p232_p2 }
   0x6   : > { %v906_v0 = vld [vmem:[%s1140_s1 + $0x40] sm:$0xff] (!%p233_p3)   ;;  %v910_v4 = vld [vmem:[%s1140_s1 + $0x48] sm:$0xff] (!%p233_p3)   ;;  %v914_v8 = vld [vmem:[%s1140_s1 + $0x50] sm:$0xff] (!%p233_p3)   ;;  %p276_p4 = scmp.lt.s32.totalorder (!%p233_p3), %s957_s18, 1  ;;  %v379_v30 = vlaneseq (!%p233_p3)  ;;  %v967_v34 = vmov (!%p233_p3), 1983009808  }
   0x7   : > { %236 = sbr.rel (%p233_p3) target bundleno = 299 (0x12b), region = 40  ;;  %v907_v1 = vld [vmem:[%s1140_s1 + $0xc0] sm:$0xff] (!%p233_p3)   ;;  %836 = vmatprep.subr.bf16.mxu0 (!%p233_p3), %v906_v0  ;;  %v911_v5 = vld [vmem:[%s1140_s1 + $0xc8] sm:$0xff] (!%p233_p3)   ;;  %v915_v9 = vld [vmem:[%s1140_s1 + $0xd0] sm:$0xff] (!%p233_p3)   ;;  %v377_v35 = vunpack.c.l.s4 (!%p233_p3), %v967_v34  ;;  %v968_v44 = vmov (!%p233_p3), 0.0  }
   0x8   : > { %v908_v2 = vld [vmem:[%s1140_s1] sm:$0xff] (!%p233_p3)   ;;  %858 = vmatprep.subr.bf16.mxu1 (!%p233_p3), %v907_v1  ;;  %v912_v6 = vld [vmem:[%s1140_s1 + $0x8] sm:$0xff] (!%p233_p3)   ;;  %v916_v10 = vld [vmem:[%s1140_s1 + $0x10] sm:$0xff] (!%p233_p3)   ;;  %v380_v36 = vshrl.u32 (!%p233_p3), %v379_v30, 7  ;;  %307 = vst [vmem:[#allocation2] sm:$0xf] (!%p233_p3), %v968_v44 }
   0x9   : > { %v909_v3 = vld [vmem:[%s1140_s1 + $0x80] sm:$0xff] (!%p233_p3)   ;;  %837 = vmatpush3.bf16.msra.mxu0 (!%p233_p3), %v908_v2  ;;  %v913_v7 = vld [vmem:[%s1140_s1 + $0x88] sm:$0xff] (!%p233_p3)   ;;  %v917_v11 = vld [vmem:[%s1140_s1 + $0x90] sm:$0xff] (!%p233_p3)   ;;  %v378_v37 = vunpack.c.0.s8 (!%p233_p3), %v377_v35 }
   0xa   : > { %859 = vmatpush3.bf16.msra.mxu1 (!%p233_p3), %v909_v3  ;;  %838 = vmatprep.subr.bf16.mxu0 (!%p233_p3), %v910_v4  ;;  %v918_v12 = vld [vmem:[%s1140_s1 + $0x58] sm:$0xff] (!%p233_p3)   ;;  %v922_v16 = vld [vmem:[%s1140_s1 + $0x60] sm:$0xff] (!%p233_p3)   ;;  %v926_v20 = vld [vmem:[%s1140_s1 + $0x68] sm:$0xff] (!%p233_p3)  }
   0xb   : > { %860 = vmatprep.subr.bf16.mxu1 (!%p233_p3), %v911_v5  ;;  %v919_v13 = vld [vmem:[%s1140_s1 + $0xd8] sm:$0xff] (!%p233_p3)   ;;  %v923_v17 = vld [vmem:[%s1140_s1 + $0xe0] sm:$0xff] (!%p233_p3)   ;;  %v927_v21 = vld [vmem:[%s1140_s1 + $0xe8] sm:$0xff] (!%p233_p3)   ;;  %v381_v39 = vsub.s32 (!%p233_p3), %v378_v37, %v380_v36 }
   0xc   : > { %v920_v14 = vld [vmem:[%s1140_s1 + $0x18] sm:$0xff] (!%p233_p3)   ;;  %v924_v18 = vld [vmem:[%s1140_s1 + $0x20] sm:$0xff] (!%p233_p3)   ;;  %v928_v22 = vld [vmem:[%s1140_s1 + $0x28] sm:$0xff] (!%p233_p3)  }
   0xd   : > { %839 = vmatpush3.bf16.msra.mxu0 (!%p233_p3), %v912_v6  ;;  %v921_v15 = vld [vmem:[%s1140_s1 + $0x98] sm:$0xff] (!%p233_p3)   ;;  %v925_v19 = vld [vmem:[%s1140_s1 + $0xa0] sm:$0xff] (!%p233_p3)   ;;  %v929_v23 = vld [vmem:[%s1140_s1 + $0xa8] sm:$0xff] (!%p233_p3)  }
   0xe   : > { %861 = vmatpush3.bf16.msra.mxu1 %v913_v7  ;;  %840 = vmatprep.subr.bf16.mxu0 %v914_v8  ;;  %s1150_s18 = smov (!%p276_p4, %s957_s18), 1  ;;  %v930_v24 = vld [vmem:[%s1140_s1 + $0x70] sm:$0xff]   ;;  %v934_v28 = vld [vmem:[%s1140_s1 + $0x78] sm:$0xff]   ;;  %v832_v58 = vld [vmem:[%s1141_s2] ss:$0 sm:$0xff] }
   0xf   : > { %862 = vmatprep.subr.bf16.mxu1 %v915_v9  ;;  %v931_v25 = vld [vmem:[%s1140_s1 + $0xf0] sm:$0xff]   ;;  %s835_s28 = sshll.u32 %s1150_s18, 3  ;;  %v935_v29 = vld [vmem:[%s1140_s1 + $0xf8] sm:$0xff]   ;;  %v308_v53 = vld [vmem:[#allocation2] sm:$0xf]  ;;  %s799_s21 = sshll.u32 %s1150_s18, 2 }
  0x10   : > { %v932_v26 = vld [vmem:[%s1140_s1 + $0x30] sm:$0xff]   ;;  %s287_s12 = scalar_lea.vmem %s1139_s0, %s835_s28  ;;  %v936_v31 = vld [vmem:[%s1140_s1 + $0x38] sm:$0xff]   ;;  %s301_s24 = scalar_lea.vmem %s1144_s5, %s799_s21 }
  0x11   : > { %841 = vmatpush3.bf16.msra.mxu0 %v916_v10  ;;  %v933_v27 = vld [vmem:[%s1140_s1 + $0xb0] sm:$0xff]   ;;  %v937_v32 = vld [vmem:[%s1140_s1 + $0xb8] sm:$0xff]   ;;  %v309_v33 = vld [vmem:[%s287_s12] sm:$0xff] }
  0x12   : > { %863 = vmatpush3.bf16.msra.mxu1 %v917_v11  ;;  %842 = vmatprep.subr.bf16.mxu0 %v918_v12  ;;  %v375_v38 = vcombine.high %v309_v33, %v309_v33  ;;  %v382_v40 = vrot.slane %v309_v33, %v381_v39 }
  0x13   : > { %864 = vmatprep.subr.bf16.mxu1 %v919_v13 }
  0x14   : > { %v389_v41 = vrot.slane %v375_v38, %v381_v39  ;;  %v390_v42 = vcombine.high %v382_v40, %v382_v40 }
  0x15   : > { %843 = vmatpush3.bf16.msra.mxu0 %v920_v14 }
  0x16   : > { %865 = vmatpush3.bf16.msra.mxu1 %v921_v15  ;;  %844 = vmatprep.subr.bf16.mxu0 %v922_v16  ;;  %v391_v43 = vcombine.high %v389_v41, %v389_v41 }
  0x17   : > { %866 = vmatprep.subr.bf16.mxu1 %v923_v17  ;;  %620 = vmatprep.mubr.bf16.mxu0 %v390_v42 }
  0x18   : > { %660 = vmatprep.mubr.bf16.mxu1 %v391_v43 }
  0x19   : > { %845 = vmatpush3.bf16.msra.mxu0 %v924_v18 }
  0x1a   : > { %867 = vmatpush3.bf16.msra.mxu1 %v925_v19  ;;  %846 = vmatprep.subr.bf16.mxu0 %v926_v20 }
  0x1b   : > { %868 = vmatprep.subr.bf16.mxu1 %v927_v21 }
  0x1d   : > { %847 = vmatpush3.bf16.msra.mxu0 %v928_v22 }
  0x1e   : > { %869 = vmatpush3.bf16.msra.mxu1 %v929_v23  ;;  %848 = vmatprep.subr.bf16.mxu0 %v930_v24 }
  0x1f   : > { %870 = vmatprep.subr.bf16.mxu1 %v931_v25 }
  0x21   : > { %849 = vmatpush3.bf16.msra.mxu0 %v932_v26 }
  0x22   : > { %871 = vmatpush3.bf16.msra.mxu1 %v933_v27  ;;  %850 = vmatprep.subr.bf16.mxu0 %v934_v28 }
  0x23   : > { %872 = vmatprep.subr.bf16.mxu1 %v935_v29 }
  0x25   : > { %851 = vmatpush3.bf16.msra.mxu0 %v936_v31 }
  0x26   : > { %873 = vmatpush3.bf16.msra.mxu1 %v937_v32 }
  0x28   : > { %621 = vmatmul.mubr.bf16.vlgmr.msra.gmra.mrb[0].mxu0 %v382_v40 }
  0x29   : > { %661 = vmatmul.mubr.bf16.vlgmr.msra.gmra.mrb[0].mxu1 %v389_v41 }
  0xfb   : > { %v852_v45 = vpop.f32.mrb[0].mxu0 }
  0xfc   : > { %v874_v46 = vpop.f32.mrb[0].mxu1  ;;  %v853_v47 = vpop.f32.mrb[1].mxu0 }
  0xfd   : > { %v875_v48 = vpop.f32.mrb[1].mxu1  ;;  %v854_v49 = vadd.f32 %v853_v47, %v852_v45  ;;  %v855_v51 = vpop.f32.mrb[2].mxu0 }
  0xfe   : > { %v876_v50 = vadd.f32 %v875_v48, %v874_v46  ;;  %v877_v52 = vpop.f32.mrb[2].mxu1  ;;  %v856_v54 = vpop.f32.mrb[3].mxu0 }
  0xff   : > { %v878_v55 = vpop.f32.mrb[3].mxu1 }
 0x100   : > { %v663_v56 = vadd.f32 %v876_v50, %v854_v49 }
 0x102   : > { %v668_v57 = vadd.f32 %v663_v56, %v308_v53 }
 0x104   : > { %669 = vst [vmem:[#allocation2] sm:$0xf] %v668_v57 }
 0x10b   : > { %v673_v59 = vld [vmem:[#allocation2] sm:$0xf] }
 0x10c   : > { %v681_v60 = vadd.f32 %v832_v58, %v673_v59 }
 0x10e   : > { %v682_v61 = vsub.f32 0.0, %v681_v60 }
 0x110   : > { %v683_v62 = vmul.f32 1.442695, %v682_v61 }
 0x112   : > { %939 = vpow2.f32 %v683_v62 }
 0x11c   : > { %v940_v63 = vpop.eup %939 }
 0x11d   : > { %v685_v0 = vadd.f32 1.0, %v940_v63 }
 0x11f   : > { %941 = vrcp.f32 %v685_v0 }
 0x129   : > { %v942_v1 = vpop.eup %941 }
 0x12a   : > { %688 = vst [vmem:[%s301_s24] sm:$0xf] %v942_v1 }
 0x12b PF: > { %s15_s20 = sadd.s32 1, %s965_s20   ;;  %s1145_s18 = smov %s961_s19 }
 0x12c   : > { %p12_p5 = scmp.ge.s32.totalorder %s15_s20, 4   ;;  %s1146_s19 = smov %s1148_s3 }
 0x12e   :  { %14 = sbr.rel (!%p12_p5) target bundleno = 2 (0x2), region = 81 }

</bundles_post_ra>
